<compile_context>
chip_gen: v6e
topology: v6e:2x2x1
jax: 0.10.0
libtpu: 0.0.40
codegen_flags: <defaults>
</compile_context>

<pallas_src>
import functools
import math

import jax
import jax.numpy as jnp
from jax.experimental import pallas as pl
from jax.experimental.pallas import tpu as pltpu

# sigmoid(x) > 0.1  <=>  x > log(0.1 / 0.9)
_LOGIT_THRESHOLD = math.log(0.1 / 0.9)  # ~= -2.1972246


def _round_up(x: int, m: int) -> int:
    return ((x + m - 1) // m) * m


def _fscore_kernel(logits_ref, labels_ref, out_ref, *,
                   beta: float, n_valid: int, tile_n: int):
    i = pl.program_id(0)

    @pl.when(i == 0)
    def _init():
        out_ref[...] = jnp.zeros_like(out_ref)

    x = logits_ref[...]   # (tile_n, C), source dtype (no full-tile widening)
    y = labels_ref[...]

    # Thresholding: one VPU compare each (no transcendental).
    pred_f = (x > jnp.asarray(_LOGIT_THRESHOLD, dtype=x.dtype)).astype(jnp.float32)
    true_f = (y > jnp.asarray(0.5, dtype=y.dtype)).astype(jnp.float32)

    # Per-sample counts over the class (lane) axis. Counts are small exact ints.
    tp = jnp.sum(pred_f * true_f, axis=1, keepdims=True)   # true positives
    pc = jnp.sum(pred_f, axis=1, keepdims=True)            # tp + fp
    tc = jnp.sum(true_f, axis=1, keepdims=True)            # tp + fn

    beta2 = jnp.float32(beta * beta)
    denom = beta2 * tc + pc
    # Every NaN->0 case of the original (0/0 in p, r, or the final ratio)
    # corresponds to tp == 0 or denom == 0 here.
    scores = jnp.where(denom > 0,
                       (1.0 + beta2) * tp / denom,
                       jnp.float32(0.0))

    # Mask rows that are only padding (N rounded up to a multiple of tile_n).
    row = jax.lax.broadcasted_iota(jnp.int32, scores.shape, 0) + i * tile_n
    scores = jnp.where(row < n_valid, scores, jnp.float32(0.0))

    out_ref[...] += jnp.sum(scores, keepdims=True)

    @pl.when(i == pl.num_programs(0) - 1)
    def _finalize():
        out_ref[...] = out_ref[...] * jnp.float32(1.0 / n_valid)


def fscore(logits: jax.Array, labels: jax.Array, beta: float,
           *, max_tile_n: int = 512) -> jax.Array:
    """Returns a length-1 float32 array containing the F-beta score."""
    if logits.shape != labels.shape:
        raise ValueError(f"Size mismatch: {logits.shape} vs {labels.shape}")

    n, c = logits.shape
    itemsize = max(logits.dtype.itemsize, labels.dtype.itemsize)

    # Keep 2 inputs x 2 pipeline buffers comfortably inside scoped VMEM on all
    # generations (v5e 16 MiB default scoped, v7x 64 MiB physical).
    budget_bytes = 8 * 1024 * 1024
    rows_fit = max(8, budget_bytes // max(1, 4 * c * itemsize))
    tile_n = min(max_tile_n, rows_fit, _round_up(n, 8))
    tile_n = max(8, (tile_n // 8) * 8)

    n_pad = _round_up(n, tile_n)
    if n_pad != n:
        pad = ((0, n_pad - n), (0, 0))
        logits = jnp.pad(logits, pad)
        labels = jnp.pad(labels, pad)

    grid = (n_pad // tile_n,)
    kernel = functools.partial(_fscore_kernel, beta=float(beta),
                               n_valid=n, tile_n=tile_n)

    bytes_accessed = (logits.size + labels.size) * itemsize + 4
    out = pl.pallas_call(
        kernel,
        out_shape=jax.ShapeDtypeStruct((1, 1), jnp.float32),
        grid_spec=pltpu.PrefetchScalarGridSpec(
            num_scalar_prefetch=0,
            grid=grid,
            in_specs=[
                pl.BlockSpec((tile_n, c), lambda i: (i, 0)),
                pl.BlockSpec((tile_n, c), lambda i: (i, 0)),
            ],
            out_specs=pl.BlockSpec((1, 1), lambda i: (0, 0)),
        ),
        compiler_params=pltpu.CompilerParams(
            dimension_semantics=("arbitrary",)),
        cost_estimate=pl.CostEstimate(
            flops=6 * n * c, transcendentals=0, bytes_accessed=bytes_accessed),
    )(logits, labels)

    # torch.tensor([score]) -> shape (1,)
    return out.reshape(1)


def _fscore_reference(logits, labels, beta):
    """Pure-JAX replica of the original numpy/torch semantics."""
    y_pred = jax.nn.sigmoid(logits.astype(jnp.float32)) > 0.1
    y_true = labels.astype(jnp.float32) > 0.5
    tp = jnp.sum(jnp.logical_and(y_pred, y_true), axis=1).astype(jnp.float32)
    fp = jnp.sum(jnp.logical_and(y_pred, ~y_true), axis=1).astype(jnp.float32)
    fn = jnp.sum(jnp.logical_and(~y_pred, y_true), axis=1).astype(jnp.float32)
    p = tp / (tp + fp)
    r = tp / (tp + fn)
    b2 = beta * beta
    s = (1.0 + b2) * p * r / (b2 * p + r)
    s = jnp.where(jnp.isnan(s), 0.0, s)
    return jnp.mean(s)


if __name__ == "__main__":
    key = jax.random.PRNGKey(0)
    k1, k2, k3, k4 = jax.random.split(key, 4)
    beta = 1.0  # module hyperparameter

    # Case 1: toy shape from the module spec (single tile).
    logits = jax.random.normal(k1, (8, 16), dtype=jnp.float32)
    labels = (jax.random.uniform(k2, (8, 16)) > 0.5).astype(jnp.float32)
    got = fscore(logits, labels, beta)
    jax.block_until_ready(got)
    want = _fscore_reference(logits, labels, beta)
    assert abs(float(got[0]) - float(want)) < 1e-5, (got, want)

    # Case 2: N not a multiple of the tile -> exercises the multi-tile
    # accumulator and the padded-row mask.
    logits2 = jax.random.normal(k3, (20, 16), dtype=jnp.float32)
    labels2 = (jax.random.uniform(k4, (20, 16)) > 0.5).astype(jnp.float32)
    got2 = fscore(logits2, labels2, beta, max_tile_n=8)
    jax.block_until_ready(got2)
    want2 = _fscore_reference(logits2, labels2, beta)
    assert abs(float(got2[0]) - float(want2)) < 1e-5, (got2, want2)

    print("KERNEL_OK")
</pallas_src>

<mosaic_0001>
module attributes {stable_mosaic.version = 11 : i64} {
  func.func @_fscore_kernel(%arg0: i32, %arg1: memref<8x16xf32, #tpu.memory_space<vmem>>, %arg2: memref<8x16xf32, #tpu.memory_space<vmem>>, %arg3: memref<1x1xf32, #tpu.memory_space<vmem>>) attributes {dimension_semantics = [#tpu.dimension_semantics<arbitrary>], iteration_bounds = array<i64: 1>, scalar_prefetch = 0 : i64, scratch_operands = 0 : i64, tpu.core_type = #tpu.core_type<tc>, window_params = [{transform_indices = @transform_0, window_bounds = array<i64: 8, 16>}, {transform_indices = @transform_1, window_bounds = array<i64: 8, 16>}, {pipeline_mode = #tpu.pipeline_mode<synchronous>, transform_indices = @transform_2, window_bounds = array<i64: 1, 1>}]} {
    %c0_i32 = arith.constant 0 : i32
    %0 = arith.cmpi eq, %arg0, %c0_i32 : i32
    %1 = arith.extui %0 : i1 to i32
    %c0_i32_0 = arith.constant 0 : i32
    %2 = arith.cmpi ne, %1, %c0_i32_0 : i32
    scf.if %2 {
      %cst_22 = arith.constant 0.000000e+00 : f32
      %50 = vector.broadcast %cst_22 : f32 to vector<1x1xf32>
      %c0_23 = arith.constant 0 : index
      %c0_24 = arith.constant 0 : index
      %51 = vector.load %arg3[%c0_23, %c0_24] : memref<1x1xf32, #tpu.memory_space<vmem>>, vector<1x1xf32>
      tpu.vector_store %arg3[%c0_23, %c0_24], %50 {strides = array<i32>} : memref<1x1xf32, #tpu.memory_space<vmem>>, vector<1x1xf32>,
    } else {
    }
    %c0 = arith.constant 0 : index
    %c0_1 = arith.constant 0 : index
    %3 = vector.load %arg1[%c0, %c0_1] : memref<8x16xf32, #tpu.memory_space<vmem>>, vector<8x16xf32>
    %c0_2 = arith.constant 0 : index
    %c0_3 = arith.constant 0 : index
    %4 = vector.load %arg2[%c0_2, %c0_3] : memref<8x16xf32, #tpu.memory_space<vmem>>, vector<8x16xf32>
    %cst = arith.constant -2.19722462 : f32
    %5 = vector.broadcast %cst : f32 to vector<8x16xf32>
    %6 = arith.cmpf ogt, %3, %5 : vector<8x16xf32>
    %7 = arith.extui %6 : vector<8x16xi1> to vector<8x16xi32>
    %8 = arith.sitofp %7 : vector<8x16xi32> to vector<8x16xf32>
    %cst_4 = arith.constant 5.000000e-01 : f32
    %9 = vector.broadcast %cst_4 : f32 to vector<8x16xf32>
    %10 = arith.cmpf ogt, %4, %9 : vector<8x16xf32>
    %11 = arith.extui %10 : vector<8x16xi1> to vector<8x16xi32>
    %12 = arith.sitofp %11 : vector<8x16xi32> to vector<8x16xf32>
    %13 = arith.mulf %8, %12 : vector<8x16xf32>
    %cst_5 = arith.constant dense<0.000000e+00> : vector<8xf32>
    %14 = vector.multi_reduction <add>, %13, %cst_5 [1] : vector<8x16xf32> to vector<8xf32>
    %15 = vector.shape_cast %14 : vector<8xf32> to vector<8x1xf32>
    %cst_6 = arith.constant dense<0.000000e+00> : vector<8xf32>
    %16 = vector.multi_reduction <add>, %8, %cst_6 [1] : vector<8x16xf32> to vector<8xf32>
    %17 = vector.shape_cast %16 : vector<8xf32> to vector<8x1xf32>
    %cst_7 = arith.constant dense<0.000000e+00> : vector<8xf32>
    %18 = vector.multi_reduction <add>, %12, %cst_7 [1] : vector<8x16xf32> to vector<8xf32>
    %19 = vector.shape_cast %18 : vector<8xf32> to vector<8x1xf32>
    %cst_8 = arith.constant 1.000000e+00 : f32
    %20 = vector.broadcast %cst_8 : f32 to vector<8x1xf32>
    %21 = arith.mulf %20, %19 : vector<8x1xf32>
    %22 = arith.addf %21, %17 : vector<8x1xf32>
    %cst_9 = arith.constant 0.000000e+00 : f32
    %23 = vector.broadcast %cst_9 : f32 to vector<8x1xf32>
    %24 = arith.cmpf ogt, %22, %23 : vector<8x1xf32>
    %cst_10 = arith.constant 1.000000e+00 : f32
    %cst_11 = arith.constant 1.000000e+00 : f32
    %25 = arith.addf %cst_10, %cst_11 : f32
    %26 = vector.broadcast %25 : f32 to vector<8x1xf32>
    %27 = arith.mulf %26, %15 : vector<8x1xf32>
    %28 = arith.divf %27, %22 : vector<8x1xf32>
    %cst_12 = arith.constant 0.000000e+00 : f32
    %29 = vector.broadcast %cst_12 : f32 to vector<8x1xf32>
    %30 = arith.select %24, %28, %29 : vector<8x1xi1>, vector<8x1xf32>
    %31 = tpu.iota {dimensions = array<i32: 0>} : vector<8x1xi32>
    %c8_i32 = arith.constant 8 : i32
    %32 = arith.muli %arg0, %c8_i32 : i32
    %33 = vector.broadcast %32 : i32 to vector<8x1xi32>
    %34 = arith.addi %31, %33 : vector<8x1xi32>
    %c8_i32_13 = arith.constant 8 : i32
    %35 = vector.broadcast %c8_i32_13 : i32 to vector<8x1xi32>
    %36 = arith.cmpi slt, %34, %35 : vector<8x1xi32>
    %cst_14 = arith.constant 0.000000e+00 : f32
    %37 = vector.broadcast %cst_14 : f32 to vector<8x1xf32>
    %38 = arith.select %36, %30, %37 : vector<8x1xi1>, vector<8x1xf32>
    %c0_15 = arith.constant 0 : index
    %c0_16 = arith.constant 0 : index
    %39 = vector.load %arg3[%c0_15, %c0_16] : memref<1x1xf32, #tpu.memory_space<vmem>>, vector<1x1xf32>
    %40 = vector.shape_cast %38 : vector<8x1xf32> to vector<1x8x1xf32>
    %cst_17 = arith.constant dense<0.000000e+00> : vector<1xf32>
    %41 = vector.multi_reduction <add>, %40, %cst_17 [1, 2] : vector<1x8x1xf32> to vector<1xf32>
    %42 = vector.shape_cast %41 : vector<1xf32> to vector<1x1x1xf32>
    %43 = vector.extract %42[0, 0, 0] : f32 from vector<1x1x1xf32>
    %44 = vector.broadcast %43 : f32 to vector<1x1xf32>
    %45 = arith.addf %39, %44 : vector<1x1xf32>
    %c0_18 = arith.constant 0 : index
    %c0_19 = arith.constant 0 : index
    %46 = vector.load %arg3[%c0_18, %c0_19] : memref<1x1xf32, #tpu.memory_space<vmem>>, vector<1x1xf32>
    tpu.vector_store %arg3[%c0_18, %c0_19], %45 {strides = array<i32>} : memref<1x1xf32, #tpu.memory_space<vmem>>, vector<1x1xf32>,
    %c0_i32_20 = arith.constant 0 : i32
    %47 = arith.cmpi eq, %arg0, %c0_i32_20 : i32
    %48 = arith.extui %47 : i1 to i32
    %c0_i32_21 = arith.constant 0 : i32
    %49 = arith.cmpi ne, %48, %c0_i32_21 : i32
    scf.if %49 {
      %c0_22 = arith.constant 0 : index
      %c0_23 = arith.constant 0 : index
      %50 = vector.load %arg3[%c0_22, %c0_23] : memref<1x1xf32, #tpu.memory_space<vmem>>, vector<1x1xf32>
      %cst_24 = arith.constant 1.250000e-01 : f32
      %51 = vector.broadcast %cst_24 : f32 to vector<1x1xf32>
      %52 = arith.mulf %50, %51 : vector<1x1xf32>
      %c0_25 = arith.constant 0 : index
      %c0_26 = arith.constant 0 : index
      %53 = vector.load %arg3[%c0_25, %c0_26] : memref<1x1xf32, #tpu.memory_space<vmem>>, vector<1x1xf32>
      tpu.vector_store %arg3[%c0_25, %c0_26], %52 {strides = array<i32>} : memref<1x1xf32, #tpu.memory_space<vmem>>, vector<1x1xf32>,
    } else {
    }
    return
  }
  func.func @transform_0(%arg0: i32) -> (i32, i32) {
    %c0_i32 = arith.constant 0 : i32
    %c0_i32_0 = arith.constant 0 : i32
    return %arg0, %c0_i32 : i32, i32
  }
  func.func @transform_1(%arg0: i32) -> (i32, i32) {
    %c0_i32 = arith.constant 0 : i32
    %c0_i32_0 = arith.constant 0 : i32
    return %arg0, %c0_i32 : i32, i32
  }
  func.func @transform_2(%arg0: i32) -> (i32, i32) {
    %c0_i32 = arith.constant 0 : i32
    %c0_i32_0 = arith.constant 0 : i32
    %c0_i32_1 = arith.constant 0 : i32
    return %c0_i32, %c0_i32_0 : i32, i32
  }
}

</mosaic_0001>

<bundles_post_ra>
// kernel: tpu_custom_call.1
= control target key start
LH: loop header
LB: loop body
LE: loop exit
PB: predicated region body
PF: predicated region fallthrough
CT: control target
= control target key end

     0   :  { %7 = vsyncpa [#allocation3], 0  ;;  %s219_s0 = inlined_call_operand.hbm [shape: f32[8,16], index: 0, kind: input, shape index: {}]   ;;  %s220_s1 = inlined_call_operand.hbm [shape: f32[8,16], index: 1, kind: input, shape index: {}]   ;;  %s221_s2 = inlined_call_operand.hbm [shape: f32[1,1], index: 2, kind: output, shape index: {}]  }
   0x1   :  { %8 = vsyncpa [#allocation6], 0 }
   0x2   :  { %9 = vsyncpa [#allocation4], 0  ;;  %s188_s9 = smov [#allocation2]   ;;  %s189_s11 = smov [#allocation5]  }
   0x3   :  { %s16_s10 = sshll.u32 %s188_s9, 4  ;;  %s26_s12 = sshll.u32 %s189_s11, 4  ;;  %s17_s10 = int_to_ptr.vmem [resolvable:$true] %s16_s10  ;;  %s27_s12 = int_to_ptr.vmem [resolvable:$true] %s26_s12 }
   0x4   :  { %s130_s13 = scalar_lea.vmem %s17_s10, 128  ;;  %p135_p1 = scmp.lt.s32.totalorder %s17_s10, %s17_s10 }
   0x5   :  { %p131_p0 = scmp.ne.s32.totalorder %s17_s10, %s130_s13  ;;  %p136_p2 = scmp.lt.s32.totalorder %s130_s13, %s130_s13 }
   0x7   :  { %p137_p3 = por %p136_p2, %p135_p1 }
   0x9   :  { %p138_p4 = pnand %p137_p3, %p131_p0 }
   0xb   :  { %141 = shalt.err (!%p138_p4)
}
   0xc   :  { %19 = dma.hbm_to_vmem [thread:$0]  %s219_s0, 128, %s17_s10, [#allocation3]  }
   0xd   :  { %s150_s16 = scalar_lea.vmem %s27_s12, 128  ;;  %p155_p6 = scmp.lt.s32.totalorder %s27_s12, %s27_s12 }
   0xe   :  { %p151_p5 = scmp.ne.s32.totalorder %s27_s12, %s150_s16  ;;  %p156_p7 = scmp.lt.s32.totalorder %s150_s16, %s150_s16 }
  0x10   :  { %p157_p8 = por %p156_p7, %p155_p6 }
  0x12   :  { %p158_p9 = pnand %p157_p8, %p151_p5 }
  0x14   :  { %161 = shalt.err (!%p158_p9)
}
  0x15   :  { %29 = dma.hbm_to_vmem [thread:$0]  %s220_s1, 128, %s27_s12, [#allocation6]  }
  0x16   :  { %182 = dma.done.wait [#allocation3], 128  }
  0x17   :  { %183 = vsyncadd [#allocation3], 4294967168 }
  0x18   :  { %184 = dma.done.wait [#allocation6], 128  }
  0x19   :  { %185 = vsyncadd [#allocation6], 4294967168  ;;  %vm40_vm0 = vcmask 0   ;;  %v190_v0 = vmov 0.0   ;;  %v42_v1 = vld [vmem:[#allocation2] sm:$0xff]  ;;  %vm51_vm1 = vcmask 130048  }
  0x1a   :  { %41 = vst.msk [vmem:[#allocation7] sm:$0x1] %vm40_vm0, %v190_v0  ;;  %v43_v2 = vld [vmem:[#allocation5] sm:$0xff]  ;;  %vm44_vm2 = vcmp.gt.f32.partialorder %v42_v1, -2.1972246  ;;  %vm75_vm4 = vcmask 7168  }
  0x1b   :  { %vm47_vm3 = vcmp.gt.f32.partialorder %v43_v2, 0.5  ;;  %v112_v3 = vsel %vm44_vm2, 1.0, %v190_v0  ;;  %s191_s1 = smov [#allocation7]  }
  0x1c   :  { %v113_v4 = vsel %vm47_vm3, 1.0, %v190_v0  ;;  %v55_v5 = vsel %vm51_vm1, %v112_v3, 0.0  ;;  %s102_s19 = sshll.u32 %s191_s1, 4  ;;  %s103_s19 = int_to_ptr.vmem [resolvable:$true] %s102_s19 }
  0x1d   :  { %v50_v6 = vmul.f32 %v113_v4, %v112_v3  ;;  %56 = vadd.xlane.f32.xlu0 %v55_v5  ;;  %v58_v7 = vsel %vm51_vm1, %v113_v4, 0.0  ;;  %s162_s20 = scalar_lea.vmem %s103_s19, 16  ;;  %s166_s21 = scalar_lea.vmem %s103_s19, 32 }
  0x1e   :  { %p163_p10 = scmp.ne.s32.totalorder %s103_s19, %s162_s20  ;;  %p167_p11 = scmp.lt.s32.totalorder %s103_s19, %s103_s19 }
  0x1f   :  { %v52_v8 = vsel %vm51_vm1, %v50_v6, 0.0  ;;  %p168_p12 = scmp.lt.s32.totalorder %s166_s21, %s162_s20 }
  0x20   :  { %53 = vadd.xlane.f32.xlu1 %v52_v8 }
  0x21   :  { %59 = vadd.xlane.f32.xlu0 %v58_v7  ;;  %v74_v25 = vld [vmem:[#allocation7] sm:$0x1]  ;;  %p169_p13 = por %p168_p12, %p167_p11 }
  0x23   :  { %p170_p0 = pnand %p169_p13, %p163_p10 }
  0xa6   :  { %v57_v9 = vpop.xlane.xlu0 %56 }
  0xa9   :  { %v54_v12 = vpop.xlane.xlu1 %53 }
  0xaa   :  { %v60_v10 = vpop.xlane.xlu0 %59  ;;  %v63_v13 = vmul.f32 2.0, %v54_v12 }
  0xab   :  { %v61_v11 = vadd.f32 %v60_v10, %v57_v9 }
  0xad   :  { %120 = vrcp.f32 %v61_v11  ;;  %vm62_vm5 = vcmp.gt.f32.partialorder %v61_v11, 0.0 }
  0xba   :  { %v121_v14 = vpop.eup %120 }
  0xbb   :  { %v65_v15 = vmul.f32 %v121_v14, %v63_v13 }
  0xbd   :  { %v66_v16 = vsel %vm62_vm5, %v65_v15, 0.0 }
  0xbe   :  { %v76_v17 = vsel %vm75_vm4, %v66_v16, 0.0 }
  0xbf   :  { %77 = vadd.xlane.f32.xlu1 %v76_v17 }
 0x148   :  { %v78_v18 = vpop.xlane.xlu1 %77 }
 0x149   :  { %v79_v19 = vrot.slane %v78_v18, 4 }
 0x14b   :  { %v80_v20 = vadd.f32 %v79_v19, %v78_v18 }
 0x14d   :  { %v81_v21 = vrot.slane %v80_v20, 2 }
 0x14f   :  { %v82_v22 = vadd.f32 %v81_v21, %v80_v20 }
 0x151   :  { %v83_v23 = vrot.slane %v82_v22, 1 }
 0x153   :  { %v84_v24 = vadd.f32 %v83_v23, %v82_v22 }
 0x155   :  { %114 = vpush %v84_v24 }
 0x186   :  { %s115_s0 = spop %114 }
 0x187   :  { %v86_v26 = vstv %s115_s0 }
 0x188   :  { %v87_v27 = vadd.f32 %v86_v26, %v74_v25 }
 0x18a   :  { %89 = vst.msk [vmem:[#allocation7] sm:$0x1] %vm40_vm0, %v87_v27 }
 0x191   :  { %v93_v28 = vld [vmem:[#allocation7] sm:$0x1] }
 0x192   :  { %v94_v29 = vmul.f32 0.125, %v93_v28 }
 0x194   :  { %95 = vst.msk [vmem:[#allocation7] sm:$0x1] %vm40_vm0, %v94_v29 }
 0x195   :  { %173 = shalt.err (!%p170_p0)
}
 0x196   :  { %105 = dma.vmem_to_hbm [thread:$0]  %s103_s19, 16, %s221_s2, [#allocation4]  }
 0x197   :  { %186 = dma.done.wait [#allocation4], 16  }
 0x198   :  { %187 = vsyncadd [#allocation4], 4294967280 }
 0x199   :  { %109 = vsyncpa [#allocation3], 1 }
 0x19a   :  { %110 = vsyncpa [#allocation6], 1 }
 0x19b   :  { %111 = vsyncpa [#allocation4], 1 }

</bundles_post_ra>
